<compile_context>
chip_gen: v7x
topology: tpu7x:2x2x1
jax: 0.10.0
libtpu: 0.0.40
codegen_flags: <defaults>
</compile_context>

<pallas_src>
from functools import lru_cache

import numpy as np
import jax
import jax.numpy as jnp
from jax.experimental import pallas as pl
from jax.experimental.pallas import tpu as pltpu


# ---------------------------------------------------------------------------
# Bilinear x2 (align_corners=False) interpolation matrices, cached per size.
# ---------------------------------------------------------------------------
def _bilinear_x2_numpy(n_in):
    n_out = 2 * n_in
    o = np.arange(n_out)
    src = (o + 0.5) * (n_in / n_out) - 0.5
    src = np.maximum(src, 0.0)                     # PyTorch clamps src >= 0
    i0 = np.minimum(np.floor(src).astype(np.int64), n_in - 1)
    i1 = np.minimum(i0 + 1, n_in - 1)
    w1 = (src - i0).astype(np.float32)
    w0 = (1.0 - w1).astype(np.float32)
    M = np.zeros((n_out, n_in), dtype=np.float32)
    M[o, i0] += w0
    M[o, i1] += w1
    return M


@lru_cache(maxsize=None)
def _uh_matrix(n_in):
    """(2n, n): row-interp matrix, applied as Uh @ plane (sublane axis)."""
    return jnp.asarray(_bilinear_x2_numpy(n_in))


@lru_cache(maxsize=None)
def _uw_t_matrix(n_in):
    """(n, 2n): transposed col-interp matrix, applied as plane @ UwT (lane axis)."""
    return jnp.asarray(_bilinear_x2_numpy(n_in).T)


# ---------------------------------------------------------------------------
# Fused multi-stage kernel: one batch element per grid step, NCHW layout.
# ---------------------------------------------------------------------------
def _make_fused_kernel(chans, num_stages):
    """chans[s] = channels entering stage s; chans[-1] = output channels."""

    def kernel(*refs):
        x_ref = refs[0]                                          # (1, C0, H, W)
        w_refs = refs[1:1 + num_stages]                          # SMEM (cout, cin)
        uh_refs = refs[1 + num_stages:1 + 2 * num_stages]        # VMEM (2h, h)
        uwt_refs = refs[1 + 2 * num_stages:1 + 3 * num_stages]   # VMEM (w, 2w)
        o_ref = refs[1 + 3 * num_stages]                         # (1, Cf, Hf, Wf)

        # Carry the activation as a list of 2-D channel planes (sublane=H, lane=W).
        planes = [x_ref[0, c] for c in range(chans[0])]

        for s in range(num_stages):
            w = w_refs[s]
            uh = uh_refs[s][...]
            uw_t = uwt_refs[s][...]
            cin, cout = chans[s], chans[s + 1]
            nxt = []
            for o in range(cout):
                # 1x1 conv (no bias): scalar-weight * plane blends on the VPU.
                acc = w[o, 0] * planes[0]
                for c in range(1, cin):
                    acc = acc + w[o, c] * planes[c]
                # Bilinear x2: lane axis (W) then sublane axis (H), both on MXU.
                t = jnp.dot(acc, uw_t, preferred_element_type=jnp.float32)  # (h, 2w)
                t = jnp.dot(uh, t, preferred_element_type=jnp.float32)      # (2h, 2w)
                nxt.append(t)
            planes = nxt

        for o in range(chans[-1]):
            o_ref[0, o] = planes[o].astype(o_ref.dtype)

    return kernel


def upsample_forward(x, weights):
    """x: (N, C, H, W) float32 NCHW.  weights[s]: (Cout_s, Cin_s) float32."""
    num_stages = len(weights)
    if num_stages == 0:
        return x

    N, C, H, W = x.shape
    chans = [C] + [int(w.shape[0]) for w in weights]
    for s, w in enumerate(weights):
        assert w.shape == (chans[s + 1], chans[s]), (w.shape, chans)

    uh_mats, uwt_mats = [], []
    h, w_ = H, W
    for _ in range(num_stages):
        uh_mats.append(_uh_matrix(h))
        uwt_mats.append(_uw_t_matrix(w_))
        h, w_ = 2 * h, 2 * w_
    Hf, Wf, Cf = h, w_, chans[-1]

    kernel = _make_fused_kernel(tuple(chans), num_stages)

    in_specs = [pl.BlockSpec((1, C, H, W), lambda n: (n, 0, 0, 0))]
    # Tiny conv weights live in SMEM for cheap scalar-indexed reads.
    in_specs += [pl.BlockSpec(memory_space=pltpu.MemorySpace.SMEM)
                 for _ in weights]
    in_specs += [pl.BlockSpec(m.shape, lambda n: (0, 0)) for m in uh_mats]
    in_specs += [pl.BlockSpec(m.shape, lambda n: (0, 0)) for m in uwt_mats]

    return pl.pallas_call(
        kernel,
        out_shape=jax.ShapeDtypeStruct((N, Cf, Hf, Wf), x.dtype),
        grid=(N,),
        in_specs=in_specs,
        out_specs=pl.BlockSpec((1, Cf, Hf, Wf), lambda n: (n, 0, 0, 0)),
        compiler_params=pltpu.CompilerParams(
            dimension_semantics=("parallel",),
            vmem_limit_bytes=32 * 1024 * 1024),
    )(x, *weights, *uh_mats, *uwt_mats)


# ---------------------------------------------------------------------------
# Module wrapper (matches PyTorch UpSample: NCHW in / NCHW out).
# ---------------------------------------------------------------------------
class UpSamplePallas:
    def __init__(self, in_channels, scale_factor, chan_factor=2, key=None):
        self.num_stages = int(np.log2(scale_factor))
        if key is None:
            key = jax.random.PRNGKey(0)
        self.weights = []
        c = in_channels
        for _ in range(self.num_stages):
            c_out = int(c // chan_factor)
            key, wk = jax.random.split(key)
            bound = 1.0 / np.sqrt(c)      # kaiming-uniform-like bound, 1x1 conv
            # Stored as (Cout, Cin): same layout as PyTorch Conv2d weight
            # (Cout, Cin, 1, 1) with the 1x1 spatial dims squeezed.
            w = jax.random.uniform(wk, (c_out, c), jnp.float32,
                                   minval=-bound, maxval=bound)
            self.weights.append(w)
            c = c_out

    def __call__(self, x_nchw):
        return upsample_forward(x_nchw, self.weights)


# Pure-JAX reference (same math, no Pallas) used as a silent sanity check.
def _reference_forward(x, weights):
    for w in weights:
        x = jnp.einsum('oc,nchw->nohw', w, x)
        uh = _uh_matrix(x.shape[2])
        uw = _uh_matrix(x.shape[3])
        x = jnp.einsum('vh,nchw->ncvw', uh, x)
        x = jnp.einsum('uw,nchw->nchu', uw, x)
    return x


if __name__ == "__main__":
    key = jax.random.PRNGKey(0)
    key, xk = jax.random.split(key)

    # in_channels=8, scale_factor=4 -> 2 fused stages: (8->4, x2) then (4->2, x2)
    N, C, H, W = 2, 8, 16, 16
    x = jax.random.normal(xk, (N, C, H, W), dtype=jnp.float32)

    model = UpSamplePallas(in_channels=C, scale_factor=4, chan_factor=2,
                           key=jax.random.PRNGKey(42))
    out = jax.block_until_ready(model(x))

    assert out.shape == (N, C // 4, H * 4, W * 4), out.shape
    assert out.dtype == jnp.float32

    ref = jax.block_until_ready(_reference_forward(x, model.weights))
    np.testing.assert_allclose(np.asarray(out), np.asarray(ref),
                               rtol=1e-2, atol=1e-2)
    print("KERNEL_OK")
</pallas_src>

<mosaic_0001>
module attributes {stable_mosaic.version = 11 : i64} {
  func.func @kernel(%arg0: i32, %arg1: memref<1x8x16x16xf32, #tpu.memory_space<vmem>>, %arg2: memref<4x8xf32, #tpu.memory_space<smem>>, %arg3: memref<2x4xf32, #tpu.memory_space<smem>>, %arg4: memref<32x16xf32, #tpu.memory_space<vmem>>, %arg5: memref<64x32xf32, #tpu.memory_space<vmem>>, %arg6: memref<16x32xf32, #tpu.memory_space<vmem>>, %arg7: memref<32x64xf32, #tpu.memory_space<vmem>>, %arg8: memref<1x2x64x64xf32, #tpu.memory_space<vmem>>) attributes {dimension_semantics = [#tpu.dimension_semantics<parallel>], iteration_bounds = array<i64: 2>, scalar_prefetch = 0 : i64, scratch_operands = 0 : i64, tpu.core_type = #tpu.core_type<tc>, window_params = [{transform_indices = @transform_0, window_bounds = array<i64: 1, 8, 16, 16>}, {transform_indices = @transform_1, window_bounds = array<i64: 4, 8>}, {transform_indices = @transform_2, window_bounds = array<i64: 2, 4>}, {pipeline_mode = #tpu.pipeline_mode<synchronous>, transform_indices = @transform_3, window_bounds = array<i64: 32, 16>}, {pipeline_mode = #tpu.pipeline_mode<synchronous>, transform_indices = @transform_4, window_bounds = array<i64: 64, 32>}, {pipeline_mode = #tpu.pipeline_mode<synchronous>, transform_indices = @transform_5, window_bounds = array<i64: 16, 32>}, {pipeline_mode = #tpu.pipeline_mode<synchronous>, transform_indices = @transform_6, window_bounds = array<i64: 32, 64>}, {transform_indices = @transform_7, window_bounds = array<i64: 1, 2, 64, 64>}]} {
    %c0 = arith.constant 0 : index
    %c0_0 = arith.constant 0 : index
    %c0_1 = arith.constant 0 : index
    %c0_2 = arith.constant 0 : index
    %0 = vector.load %arg1[%c0, %c0_0, %c0_1, %c0_2] : memref<1x8x16x16xf32, #tpu.memory_space<vmem>>, vector<1x1x16x16xf32>
    %1 = vector.shape_cast %0 : vector<1x1x16x16xf32> to vector<16x16xf32>
    %c0_3 = arith.constant 0 : index
    %c1 = arith.constant 1 : index
    %c0_4 = arith.constant 0 : index
    %c0_5 = arith.constant 0 : index
    %2 = vector.load %arg1[%c0_3, %c1, %c0_4, %c0_5] : memref<1x8x16x16xf32, #tpu.memory_space<vmem>>, vector<1x1x16x16xf32>
    %3 = vector.shape_cast %2 : vector<1x1x16x16xf32> to vector<16x16xf32>
    %c0_6 = arith.constant 0 : index
    %c2 = arith.constant 2 : index
    %c0_7 = arith.constant 0 : index
    %c0_8 = arith.constant 0 : index
    %4 = vector.load %arg1[%c0_6, %c2, %c0_7, %c0_8] : memref<1x8x16x16xf32, #tpu.memory_space<vmem>>, vector<1x1x16x16xf32>
    %5 = vector.shape_cast %4 : vector<1x1x16x16xf32> to vector<16x16xf32>
    %c0_9 = arith.constant 0 : index
    %c3 = arith.constant 3 : index
    %c0_10 = arith.constant 0 : index
    %c0_11 = arith.constant 0 : index
    %6 = vector.load %arg1[%c0_9, %c3, %c0_10, %c0_11] : memref<1x8x16x16xf32, #tpu.memory_space<vmem>>, vector<1x1x16x16xf32>
    %7 = vector.shape_cast %6 : vector<1x1x16x16xf32> to vector<16x16xf32>
    %c0_12 = arith.constant 0 : index
    %c4 = arith.constant 4 : index
    %c0_13 = arith.constant 0 : index
    %c0_14 = arith.constant 0 : index
    %8 = vector.load %arg1[%c0_12, %c4, %c0_13, %c0_14] : memref<1x8x16x16xf32, #tpu.memory_space<vmem>>, vector<1x1x16x16xf32>
    %9 = vector.shape_cast %8 : vector<1x1x16x16xf32> to vector<16x16xf32>
    %c0_15 = arith.constant 0 : index
    %c5 = arith.constant 5 : index
    %c0_16 = arith.constant 0 : index
    %c0_17 = arith.constant 0 : index
    %10 = vector.load %arg1[%c0_15, %c5, %c0_16, %c0_17] : memref<1x8x16x16xf32, #tpu.memory_space<vmem>>, vector<1x1x16x16xf32>
    %11 = vector.shape_cast %10 : vector<1x1x16x16xf32> to vector<16x16xf32>
    %c0_18 = arith.constant 0 : index
    %c6 = arith.constant 6 : index
    %c0_19 = arith.constant 0 : index
    %c0_20 = arith.constant 0 : index
    %12 = vector.load %arg1[%c0_18, %c6, %c0_19, %c0_20] : memref<1x8x16x16xf32, #tpu.memory_space<vmem>>, vector<1x1x16x16xf32>
    %13 = vector.shape_cast %12 : vector<1x1x16x16xf32> to vector<16x16xf32>
    %c0_21 = arith.constant 0 : index
    %c7 = arith.constant 7 : index
    %c0_22 = arith.constant 0 : index
    %c0_23 = arith.constant 0 : index
    %14 = vector.load %arg1[%c0_21, %c7, %c0_22, %c0_23] : memref<1x8x16x16xf32, #tpu.memory_space<vmem>>, vector<1x1x16x16xf32>
    %15 = vector.shape_cast %14 : vector<1x1x16x16xf32> to vector<16x16xf32>
    %c0_24 = arith.constant 0 : index
    %c0_25 = arith.constant 0 : index
    %16 = vector.load %arg4[%c0_24, %c0_25] : memref<32x16xf32, #tpu.memory_space<vmem>>, vector<32x16xf32>
    %c0_26 = arith.constant 0 : index
    %c0_27 = arith.constant 0 : index
    %17 = vector.load %arg6[%c0_26, %c0_27] : memref<16x32xf32, #tpu.memory_space<vmem>>, vector<16x32xf32>
    %c0_28 = arith.constant 0 : index
    %c0_29 = arith.constant 0 : index
    %18 = memref.load %arg2[%c0_28, %c0_29] : memref<4x8xf32, #tpu.memory_space<smem>>
    %19 = vector.broadcast %18 : f32 to vector<16x16xf32>
    %20 = arith.mulf %19, %1 : vector<16x16xf32>
    %c0_30 = arith.constant 0 : index
    %c1_31 = arith.constant 1 : index
    %21 = memref.load %arg2[%c0_30, %c1_31] : memref<4x8xf32, #tpu.memory_space<smem>>
    %22 = vector.broadcast %21 : f32 to vector<16x16xf32>
    %23 = arith.mulf %22, %3 : vector<16x16xf32>
    %24 = arith.addf %20, %23 : vector<16x16xf32>
    %c0_32 = arith.constant 0 : index
    %c2_33 = arith.constant 2 : index
    %25 = memref.load %arg2[%c0_32, %c2_33] : memref<4x8xf32, #tpu.memory_space<smem>>
    %26 = vector.broadcast %25 : f32 to vector<16x16xf32>
    %27 = arith.mulf %26, %5 : vector<16x16xf32>
    %28 = arith.addf %24, %27 : vector<16x16xf32>
    %c0_34 = arith.constant 0 : index
    %c3_35 = arith.constant 3 : index
    %29 = memref.load %arg2[%c0_34, %c3_35] : memref<4x8xf32, #tpu.memory_space<smem>>
    %30 = vector.broadcast %29 : f32 to vector<16x16xf32>
    %31 = arith.mulf %30, %7 : vector<16x16xf32>
    %32 = arith.addf %28, %31 : vector<16x16xf32>
    %c0_36 = arith.constant 0 : index
    %c4_37 = arith.constant 4 : index
    %33 = memref.load %arg2[%c0_36, %c4_37] : memref<4x8xf32, #tpu.memory_space<smem>>
    %34 = vector.broadcast %33 : f32 to vector<16x16xf32>
    %35 = arith.mulf %34, %9 : vector<16x16xf32>
    %36 = arith.addf %32, %35 : vector<16x16xf32>
    %c0_38 = arith.constant 0 : index
    %c5_39 = arith.constant 5 : index
    %37 = memref.load %arg2[%c0_38, %c5_39] : memref<4x8xf32, #tpu.memory_space<smem>>
    %38 = vector.broadcast %37 : f32 to vector<16x16xf32>
    %39 = arith.mulf %38, %11 : vector<16x16xf32>
    %40 = arith.addf %36, %39 : vector<16x16xf32>
    %c0_40 = arith.constant 0 : index
    %c6_41 = arith.constant 6 : index
    %41 = memref.load %arg2[%c0_40, %c6_41] : memref<4x8xf32, #tpu.memory_space<smem>>
    %42 = vector.broadcast %41 : f32 to vector<16x16xf32>
    %43 = arith.mulf %42, %13 : vector<16x16xf32>
    %44 = arith.addf %40, %43 : vector<16x16xf32>
    %c0_42 = arith.constant 0 : index
    %c7_43 = arith.constant 7 : index
    %45 = memref.load %arg2[%c0_42, %c7_43] : memref<4x8xf32, #tpu.memory_space<smem>>
    %46 = vector.broadcast %45 : f32 to vector<16x16xf32>
    %47 = arith.mulf %46, %15 : vector<16x16xf32>
    %48 = arith.addf %44, %47 : vector<16x16xf32>
    %cst = arith.constant dense<0.000000e+00> : vector<16x32xf32>
    %49 = tpu.matmul %48, %17, %cst {dimension_numbers = #tpu.dot_dimension_numbers<[1], [0], [0], [1], [0, 0, 1, 1], [], []>} : vector<16x16xf32>, vector<16x32xf32>, vector<16x32xf32> -> vector<16x32xf32>
    %cst_44 = arith.constant dense<0.000000e+00> : vector<32x32xf32>
    %50 = tpu.matmul %16, %49, %cst_44 {dimension_numbers = #tpu.dot_dimension_numbers<[1], [0], [0], [1], [0, 0, 1, 1], [], []>} : vector<32x16xf32>, vector<16x32xf32>, vector<32x32xf32> -> vector<32x32xf32>
    %c1_45 = arith.constant 1 : index
    %c0_46 = arith.constant 0 : index
    %51 = memref.load %arg2[%c1_45, %c0_46] : memref<4x8xf32, #tpu.memory_space<smem>>
    %52 = vector.broadcast %51 : f32 to vector<16x16xf32>
    %53 = arith.mulf %52, %1 : vector<16x16xf32>
    %c1_47 = arith.constant 1 : index
    %c1_48 = arith.constant 1 : index
    %54 = memref.load %arg2[%c1_47, %c1_48] : memref<4x8xf32, #tpu.memory_space<smem>>
    %55 = vector.broadcast %54 : f32 to vector<16x16xf32>
    %56 = arith.mulf %55, %3 : vector<16x16xf32>
    %57 = arith.addf %53, %56 : vector<16x16xf32>
    %c1_49 = arith.constant 1 : index
    %c2_50 = arith.constant 2 : index
    %58 = memref.load %arg2[%c1_49, %c2_50] : memref<4x8xf32, #tpu.memory_space<smem>>
    %59 = vector.broadcast %58 : f32 to vector<16x16xf32>
    %60 = arith.mulf %59, %5 : vector<16x16xf32>
    %61 = arith.addf %57, %60 : vector<16x16xf32>
    %c1_51 = arith.constant 1 : index
    %c3_52 = arith.constant 3 : index
    %62 = memref.load %arg2[%c1_51, %c3_52] : memref<4x8xf32, #tpu.memory_space<smem>>
    %63 = vector.broadcast %62 : f32 to vector<16x16xf32>
    %64 = arith.mulf %63, %7 : vector<16x16xf32>
    %65 = arith.addf %61, %64 : vector<16x16xf32>
    %c1_53 = arith.constant 1 : index
    %c4_54 = arith.constant 4 : index
    %66 = memref.load %arg2[%c1_53, %c4_54] : memref<4x8xf32, #tpu.memory_space<smem>>
    %67 = vector.broadcast %66 : f32 to vector<16x16xf32>
    %68 = arith.mulf %67, %9 : vector<16x16xf32>
    %69 = arith.addf %65, %68 : vector<16x16xf32>
    %c1_55 = arith.constant 1 : index
    %c5_56 = arith.constant 5 : index
    %70 = memref.load %arg2[%c1_55, %c5_56] : memref<4x8xf32, #tpu.memory_space<smem>>
    %71 = vector.broadcast %70 : f32 to vector<16x16xf32>
    %72 = arith.mulf %71, %11 : vector<16x16xf32>
    %73 = arith.addf %69, %72 : vector<16x16xf32>
    %c1_57 = arith.constant 1 : index
    %c6_58 = arith.constant 6 : index
    %74 = memref.load %arg2[%c1_57, %c6_58] : memref<4x8xf32, #tpu.memory_space<smem>>
    %75 = vector.broadcast %74 : f32 to vector<16x16xf32>
    %76 = arith.mulf %75, %13 : vector<16x16xf32>
    %77 = arith.addf %73, %76 : vector<16x16xf32>
    %c1_59 = arith.constant 1 : index
    %c7_60 = arith.constant 7 : index
    %78 = memref.load %arg2[%c1_59, %c7_60] : memref<4x8xf32, #tpu.memory_space<smem>>
    %79 = vector.broadcast %78 : f32 to vector<16x16xf32>
    %80 = arith.mulf %79, %15 : vector<16x16xf32>
    %81 = arith.addf %77, %80 : vector<16x16xf32>
    %cst_61 = arith.constant dense<0.000000e+00> : vector<16x32xf32>
    %82 = tpu.matmul %81, %17, %cst_61 {dimension_numbers = #tpu.dot_dimension_numbers<[1], [0], [0], [1], [0, 0, 1, 1], [], []>} : vector<16x16xf32>, vector<16x32xf32>, vector<16x32xf32> -> vector<16x32xf32>
    %cst_62 = arith.constant dense<0.000000e+00> : vector<32x32xf32>
    %83 = tpu.matmul %16, %82, %cst_62 {dimension_numbers = #tpu.dot_dimension_numbers<[1], [0], [0], [1], [0, 0, 1, 1], [], []>} : vector<32x16xf32>, vector<16x32xf32>, vector<32x32xf32> -> vector<32x32xf32>
    %c2_63 = arith.constant 2 : index
    %c0_64 = arith.constant 0 : index
    %84 = memref.load %arg2[%c2_63, %c0_64] : memref<4x8xf32, #tpu.memory_space<smem>>
    %85 = vector.broadcast %84 : f32 to vector<16x16xf32>
    %86 = arith.mulf %85, %1 : vector<16x16xf32>
    %c2_65 = arith.constant 2 : index
    %c1_66 = arith.constant 1 : index
    %87 = memref.load %arg2[%c2_65, %c1_66] : memref<4x8xf32, #tpu.memory_space<smem>>
    %88 = vector.broadcast %87 : f32 to vector<16x16xf32>
    %89 = arith.mulf %88, %3 : vector<16x16xf32>
    %90 = arith.addf %86, %89 : vector<16x16xf32>
    %c2_67 = arith.constant 2 : index
    %c2_68 = arith.constant 2 : index
    %91 = memref.load %arg2[%c2_67, %c2_68] : memref<4x8xf32, #tpu.memory_space<smem>>
    %92 = vector.broadcast %91 : f32 to vector<16x16xf32>
    %93 = arith.mulf %92, %5 : vector<16x16xf32>
    %94 = arith.addf %90, %93 : vector<16x16xf32>
    %c2_69 = arith.constant 2 : index
    %c3_70 = arith.constant 3 : index
    %95 = memref.load %arg2[%c2_69, %c3_70] : memref<4x8xf32, #tpu.memory_space<smem>>
    %96 = vector.broadcast %95 : f32 to vector<16x16xf32>
    %97 = arith.mulf %96, %7 : vector<16x16xf32>
    %98 = arith.addf %94, %97 : vector<16x16xf32>
    %c2_71 = arith.constant 2 : index
    %c4_72 = arith.constant 4 : index
    %99 = memref.load %arg2[%c2_71, %c4_72] : memref<4x8xf32, #tpu.memory_space<smem>>
    %100 = vector.broadcast %99 : f32 to vector<16x16xf32>
    %101 = arith.mulf %100, %9 : vector<16x16xf32>
    %102 = arith.addf %98, %101 : vector<16x16xf32>
    %c2_73 = arith.constant 2 : index
    %c5_74 = arith.constant 5 : index
    %103 = memref.load %arg2[%c2_73, %c5_74] : memref<4x8xf32, #tpu.memory_space<smem>>
    %104 = vector.broadcast %103 : f32 to vector<16x16xf32>
    %105 = arith.mulf %104, %11 : vector<16x16xf32>
    %106 = arith.addf %102, %105 : vector<16x16xf32>
    %c2_75 = arith.constant 2 : index
    %c6_76 = arith.constant 6 : index
    %107 = memref.load %arg2[%c2_75, %c6_76] : memref<4x8xf32, #tpu.memory_space<smem>>
    %108 = vector.broadcast %107 : f32 to vector<16x16xf32>
    %109 = arith.mulf %108, %13 : vector<16x16xf32>
    %110 = arith.addf %106, %109 : vector<16x16xf32>
    %c2_77 = arith.constant 2 : index
    %c7_78 = arith.constant 7 : index
    %111 = memref.load %arg2[%c2_77, %c7_78] : memref<4x8xf32, #tpu.memory_space<smem>>
    %112 = vector.broadcast %111 : f32 to vector<16x16xf32>
    %113 = arith.mulf %112, %15 : vector<16x16xf32>
    %114 = arith.addf %110, %113 : vector<16x16xf32>
    %cst_79 = arith.constant dense<0.000000e+00> : vector<16x32xf32>
    %115 = tpu.matmul %114, %17, %cst_79 {dimension_numbers = #tpu.dot_dimension_numbers<[1], [0], [0], [1], [0, 0, 1, 1], [], []>} : vector<16x16xf32>, vector<16x32xf32>, vector<16x32xf32> -> vector<16x32xf32>
    %cst_80 = arith.constant dense<0.000000e+00> : vector<32x32xf32>
    %116 = tpu.matmul %16, %115, %cst_80 {dimension_numbers = #tpu.dot_dimension_numbers<[1], [0], [0], [1], [0, 0, 1, 1], [], []>} : vector<32x16xf32>, vector<16x32xf32>, vector<32x32xf32> -> vector<32x32xf32>
    %c3_81 = arith.constant 3 : index
    %c0_82 = arith.constant 0 : index
    %117 = memref.load %arg2[%c3_81, %c0_82] : memref<4x8xf32, #tpu.memory_space<smem>>
    %118 = vector.broadcast %117 : f32 to vector<16x16xf32>
    %119 = arith.mulf %118, %1 : vector<16x16xf32>
    %c3_83 = arith.constant 3 : index
    %c1_84 = arith.constant 1 : index
    %120 = memref.load %arg2[%c3_83, %c1_84] : memref<4x8xf32, #tpu.memory_space<smem>>
    %121 = vector.broadcast %120 : f32 to vector<16x16xf32>
    %122 = arith.mulf %121, %3 : vector<16x16xf32>
    %123 = arith.addf %119, %122 : vector<16x16xf32>
    %c3_85 = arith.constant 3 : index
    %c2_86 = arith.constant 2 : index
    %124 = memref.load %arg2[%c3_85, %c2_86] : memref<4x8xf32, #tpu.memory_space<smem>>
    %125 = vector.broadcast %124 : f32 to vector<16x16xf32>
    %126 = arith.mulf %125, %5 : vector<16x16xf32>
    %127 = arith.addf %123, %126 : vector<16x16xf32>
    %c3_87 = arith.constant 3 : index
    %c3_88 = arith.constant 3 : index
    %128 = memref.load %arg2[%c3_87, %c3_88] : memref<4x8xf32, #tpu.memory_space<smem>>
    %129 = vector.broadcast %128 : f32 to vector<16x16xf32>
    %130 = arith.mulf %129, %7 : vector<16x16xf32>
    %131 = arith.addf %127, %130 : vector<16x16xf32>
    %c3_89 = arith.constant 3 : index
    %c4_90 = arith.constant 4 : index
    %132 = memref.load %arg2[%c3_89, %c4_90] : memref<4x8xf32, #tpu.memory_space<smem>>
    %133 = vector.broadcast %132 : f32 to vector<16x16xf32>
    %134 = arith.mulf %133, %9 : vector<16x16xf32>
    %135 = arith.addf %131, %134 : vector<16x16xf32>
    %c3_91 = arith.constant 3 : index
    %c5_92 = arith.constant 5 : index
    %136 = memref.load %arg2[%c3_91, %c5_92] : memref<4x8xf32, #tpu.memory_space<smem>>
    %137 = vector.broadcast %136 : f32 to vector<16x16xf32>
    %138 = arith.mulf %137, %11 : vector<16x16xf32>
    %139 = arith.addf %135, %138 : vector<16x16xf32>
    %c3_93 = arith.constant 3 : index
    %c6_94 = arith.constant 6 : index
    %140 = memref.load %arg2[%c3_93, %c6_94] : memref<4x8xf32, #tpu.memory_space<smem>>
    %141 = vector.broadcast %140 : f32 to vector<16x16xf32>
    %142 = arith.mulf %141, %13 : vector<16x16xf32>
    %143 = arith.addf %139, %142 : vector<16x16xf32>
    %c3_95 = arith.constant 3 : index
    %c7_96 = arith.constant 7 : index
    %144 = memref.load %arg2[%c3_95, %c7_96] : memref<4x8xf32, #tpu.memory_space<smem>>
    %145 = vector.broadcast %144 : f32 to vector<16x16xf32>
    %146 = arith.mulf %145, %15 : vector<16x16xf32>
    %147 = arith.addf %143, %146 : vector<16x16xf32>
    %cst_97 = arith.constant dense<0.000000e+00> : vector<16x32xf32>
    %148 = tpu.matmul %147, %17, %cst_97 {dimension_numbers = #tpu.dot_dimension_numbers<[1], [0], [0], [1], [0, 0, 1, 1], [], []>} : vector<16x16xf32>, vector<16x32xf32>, vector<16x32xf32> -> vector<16x32xf32>
    %cst_98 = arith.constant dense<0.000000e+00> : vector<32x32xf32>
    %149 = tpu.matmul %16, %148, %cst_98 {dimension_numbers = #tpu.dot_dimension_numbers<[1], [0], [0], [1], [0, 0, 1, 1], [], []>} : vector<32x16xf32>, vector<16x32xf32>, vector<32x32xf32> -> vector<32x32xf32>
    %c0_99 = arith.constant 0 : index
    %c0_100 = arith.constant 0 : index
    %150 = vector.load %arg5[%c0_99, %c0_100] : memref<64x32xf32, #tpu.memory_space<vmem>>, vector<64x32xf32>
    %c0_101 = arith.constant 0 : index
    %c0_102 = arith.constant 0 : index
    %151 = vector.load %arg7[%c0_101, %c0_102] : memref<32x64xf32, #tpu.memory_space<vmem>>, vector<32x64xf32>
    %c0_103 = arith.constant 0 : index
    %c0_104 = arith.constant 0 : index
    %152 = memref.load %arg3[%c0_103, %c0_104] : memref<2x4xf32, #tpu.memory_space<smem>>
    %153 = vector.broadcast %152 : f32 to vector<32x32xf32>
    %154 = arith.mulf %153, %50 : vector<32x32xf32>
    %c0_105 = arith.constant 0 : index
    %c1_106 = arith.constant 1 : index
    %155 = memref.load %arg3[%c0_105, %c1_106] : memref<2x4xf32, #tpu.memory_space<smem>>
    %156 = vector.broadcast %155 : f32 to vector<32x32xf32>
    %157 = arith.mulf %156, %83 : vector<32x32xf32>
    %158 = arith.addf %154, %157 : vector<32x32xf32>
    %c0_107 = arith.constant 0 : index
    %c2_108 = arith.constant 2 : index
    %159 = memref.load %arg3[%c0_107, %c2_108] : memref<2x4xf32, #tpu.memory_space<smem>>
    %160 = vector.broadcast %159 : f32 to vector<32x32xf32>
    %161 = arith.mulf %160, %116 : vector<32x32xf32>
    %162 = arith.addf %158, %161 : vector<32x32xf32>
    %c0_109 = arith.constant 0 : index
    %c3_110 = arith.constant 3 : index
    %163 = memref.load %arg3[%c0_109, %c3_110] : memref<2x4xf32, #tpu.memory_space<smem>>
    %164 = vector.broadcast %163 : f32 to vector<32x32xf32>
    %165 = arith.mulf %164, %149 : vector<32x32xf32>
    %166 = arith.addf %162, %165 : vector<32x32xf32>
    %cst_111 = arith.constant dense<0.000000e+00> : vector<32x64xf32>
    %167 = tpu.matmul %166, %151, %cst_111 {dimension_numbers = #tpu.dot_dimension_numbers<[1], [0], [0], [1], [0, 0, 1, 1], [], []>} : vector<32x32xf32>, vector<32x64xf32>, vector<32x64xf32> -> vector<32x64xf32>
    %cst_112 = arith.constant dense<0.000000e+00> : vector<64x64xf32>
    %168 = tpu.matmul %150, %167, %cst_112 {dimension_numbers = #tpu.dot_dimension_numbers<[1], [0], [0], [1], [0, 0, 1, 1], [], []>} : vector<64x32xf32>, vector<32x64xf32>, vector<64x64xf32> -> vector<64x64xf32>
    %c1_113 = arith.constant 1 : index
    %c0_114 = arith.constant 0 : index
    %169 = memref.load %arg3[%c1_113, %c0_114] : memref<2x4xf32, #tpu.memory_space<smem>>
    %170 = vector.broadcast %169 : f32 to vector<32x32xf32>
    %171 = arith.mulf %170, %50 : vector<32x32xf32>
    %c1_115 = arith.constant 1 : index
    %c1_116 = arith.constant 1 : index
    %172 = memref.load %arg3[%c1_115, %c1_116] : memref<2x4xf32, #tpu.memory_space<smem>>
    %173 = vector.broadcast %172 : f32 to vector<32x32xf32>
    %174 = arith.mulf %173, %83 : vector<32x32xf32>
    %175 = arith.addf %171, %174 : vector<32x32xf32>
    %c1_117 = arith.constant 1 : index
    %c2_118 = arith.constant 2 : index
    %176 = memref.load %arg3[%c1_117, %c2_118] : memref<2x4xf32, #tpu.memory_space<smem>>
    %177 = vector.broadcast %176 : f32 to vector<32x32xf32>
    %178 = arith.mulf %177, %116 : vector<32x32xf32>
    %179 = arith.addf %175, %178 : vector<32x32xf32>
    %c1_119 = arith.constant 1 : index
    %c3_120 = arith.constant 3 : index
    %180 = memref.load %arg3[%c1_119, %c3_120] : memref<2x4xf32, #tpu.memory_space<smem>>
    %181 = vector.broadcast %180 : f32 to vector<32x32xf32>
    %182 = arith.mulf %181, %149 : vector<32x32xf32>
    %183 = arith.addf %179, %182 : vector<32x32xf32>
    %cst_121 = arith.constant dense<0.000000e+00> : vector<32x64xf32>
    %184 = tpu.matmul %183, %151, %cst_121 {dimension_numbers = #tpu.dot_dimension_numbers<[1], [0], [0], [1], [0, 0, 1, 1], [], []>} : vector<32x32xf32>, vector<32x64xf32>, vector<32x64xf32> -> vector<32x64xf32>
    %cst_122 = arith.constant dense<0.000000e+00> : vector<64x64xf32>
    %185 = tpu.matmul %150, %184, %cst_122 {dimension_numbers = #tpu.dot_dimension_numbers<[1], [0], [0], [1], [0, 0, 1, 1], [], []>} : vector<64x32xf32>, vector<32x64xf32>, vector<64x64xf32> -> vector<64x64xf32>
    %c0_123 = arith.constant 0 : index
    %c0_124 = arith.constant 0 : index
    %c0_125 = arith.constant 0 : index
    %c0_126 = arith.constant 0 : index
    %186 = vector.load %arg8[%c0_123, %c0_124, %c0_125, %c0_126] : memref<1x2x64x64xf32, #tpu.memory_space<vmem>>, vector<1x1x64x64xf32>
    %187 = vector.shape_cast %186 : vector<1x1x64x64xf32> to vector<64x64xf32>
    %188 = vector.shape_cast %168 : vector<64x64xf32> to vector<1x1x64x64xf32>
    tpu.vector_store %arg8[%c0_123, %c0_124, %c0_125, %c0_126], %188 {strides = array<i32>} : memref<1x2x64x64xf32, #tpu.memory_space<vmem>>, vector<1x1x64x64xf32>,
    %c0_127 = arith.constant 0 : index
    %c1_128 = arith.constant 1 : index
    %c0_129 = arith.constant 0 : index
    %c0_130 = arith.constant 0 : index
    %189 = vector.load %arg8[%c0_127, %c1_128, %c0_129, %c0_130] : memref<1x2x64x64xf32, #tpu.memory_space<vmem>>, vector<1x1x64x64xf32>
    %190 = vector.shape_cast %189 : vector<1x1x64x64xf32> to vector<64x64xf32>
    %191 = vector.shape_cast %185 : vector<64x64xf32> to vector<1x1x64x64xf32>
    tpu.vector_store %arg8[%c0_127, %c1_128, %c0_129, %c0_130], %191 {strides = array<i32>} : memref<1x2x64x64xf32, #tpu.memory_space<vmem>>, vector<1x1x64x64xf32>,
    return
  }
  func.func @transform_0(%arg0: i32) -> (i32, i32, i32, i32) {
    %c0_i32 = arith.constant 0 : i32
    %c0_i32_0 = arith.constant 0 : i32
    %c0_i32_1 = arith.constant 0 : i32
    %c0_i32_2 = arith.constant 0 : i32
    return %arg0, %c0_i32, %c0_i32_0, %c0_i32_1 : i32, i32, i32, i32
  }
  func.func @transform_1(%arg0: i32) -> (i32, i32) {
    %c0_i32 = arith.constant 0 : i32
    %c0_i32_0 = arith.constant 0 : i32
    %c0_i32_1 = arith.constant 0 : i32
    return %c0_i32, %c0_i32_0 : i32, i32
  }
  func.func @transform_2(%arg0: i32) -> (i32, i32) {
    %c0_i32 = arith.constant 0 : i32
    %c0_i32_0 = arith.constant 0 : i32
    %c0_i32_1 = arith.constant 0 : i32
    return %c0_i32, %c0_i32_0 : i32, i32
  }
  func.func @transform_3(%arg0: i32) -> (i32, i32) {
    %c0_i32 = arith.constant 0 : i32
    %c0_i32_0 = arith.constant 0 : i32
    %c0_i32_1 = arith.constant 0 : i32
    return %c0_i32, %c0_i32_0 : i32, i32
  }
  func.func @transform_4(%arg0: i32) -> (i32, i32) {
    %c0_i32 = arith.constant 0 : i32
    %c0_i32_0 = arith.constant 0 : i32
    %c0_i32_1 = arith.constant 0 : i32
    return %c0_i32, %c0_i32_0 : i32, i32
  }
  func.func @transform_5(%arg0: i32) -> (i32, i32) {
    %c0_i32 = arith.constant 0 : i32
    %c0_i32_0 = arith.constant 0 : i32
    %c0_i32_1 = arith.constant 0 : i32
    return %c0_i32, %c0_i32_0 : i32, i32
  }
  func.func @transform_6(%arg0: i32) -> (i32, i32) {
    %c0_i32 = arith.constant 0 : i32
    %c0_i32_0 = arith.constant 0 : i32
    %c0_i32_1 = arith.constant 0 : i32
    return %c0_i32, %c0_i32_0 : i32, i32
  }
  func.func @transform_7(%arg0: i32) -> (i32, i32, i32, i32) {
    %c0_i32 = arith.constant 0 : i32
    %c0_i32_0 = arith.constant 0 : i32
    %c0_i32_1 = arith.constant 0 : i32
    %c0_i32_2 = arith.constant 0 : i32
    return %arg0, %c0_i32, %c0_i32_0, %c0_i32_1 : i32, i32, i32, i32
  }
}

</mosaic_0001>

<bundles_post_ra>
// kernel: tpu_custom_call.1
= control target key start
LH: loop header
LB: loop body
LE: loop exit
PB: predicated region body
PF: predicated region fallthrough
CT: control target
= control target key end

     0   :  { %s3073_s0 = inlined_call_operand.hbm [shape: f32[2,8,16,16], index: 0, kind: input, shape index: {}]   ;;  %s3074_s1 = inlined_call_operand.vmem [shape: f32[4,8], index: 1, kind: input, shape index: {}]   ;;  %s3075_s2 = inlined_call_operand.vmem [shape: f32[2,4], index: 2, kind: input, shape index: {}]   ;;  %s3076_s3 = inlined_call_operand.vmem [shape: f32[32,16], index: 3, kind: input, shape index: {}]   ;;  %s3077_s4 = inlined_call_operand.vmem [shape: f32[64,32], index: 4, kind: input, shape index: {}]   ;;  %s3078_s5 = inlined_call_operand.vmem [shape: f32[16,32], index: 5, kind: input, shape index: {}]   ;;  %s3079_s6 = inlined_call_operand.vmem [shape: f32[32,64], index: 6, kind: input, shape index: {}]   ;;  %s3080_s7 = inlined_call_operand.hbm [shape: f32[2,2,64,64], index: 7, kind: output, shape index: {}]  }
   0x1   :  { %3086 = sst [smem:[#allocation14_spill]] %s3074_s1 }
   0x2   :  { %12 = vsyncpa [#allocation3], 0 }
   0x3   :  { %14 = vsyncpa [#allocation3 + $0x1], 0 }
   0x4   :  { %15 = vsyncpa [#allocation5], 0 }
   0x5   :  { %16 = vsyncpa [#allocation8], 0 }
   0x6   :  { %17 = vsyncpa [#allocation4], 0 }
   0x7   :  { %19 = vsyncpa [#allocation4 + $0x1], 0  ;;  %s2519_s24 = smov 0   ;;  %s2521_s25 = smov 0  }
   0x8   :  { %s2523_s26 = smov 0   ;;  %s2525_s27 = smov 0  }
   0x9 LB: > { %s2540_s28 = sadd.s32 4294967295, %s2469_s27   ;;  %s1854_s29 = sadd.s32 4294967294, %s2469_s27   ;;  %s2469_s27 = sphi %s2525_s27, %s3108_s27   ;;  %s2465_s26 = sphi %s2523_s26, %s3107_s26   ;;  %s2461_s25 = sphi %s2521_s25, %s3106_s25   ;;  %s2457_s24 = sphi %s2519_s24, %s3105_s24  }
   0xa   : > { %s2544_s30 = sadd.s32 1, %s2469_s27   ;;  %s32_s8 = sadd.s32 1, %s2465_s26 }
   0xb   : > { %s29_s9 = ssub.s32 %s2469_s27, %s2544_s30  ;;  %p39_p0 = scmp.ne.s32.totalorder %s2465_s26, %s2461_s25 }
   0xc   : > { %p30_p1 = scmp.eq.s32.totalorder %s29_s9, 0  ;;  %p40_p2 = scmp.eq.s32.totalorder %s2469_s27, 0 }
   0xd   : > { %p45_p3 = scmp.ne.s32.totalorder %s2461_s25, %s2457_s24  ;;  %p3081_p4 = scmp.eq.s32.totalorder %s2540_s28, 0 }
   0xe   : > { %s2556_s10 = scalar_select %p30_p1, %s2465_s26, %s32_s8  }
   0xf   : > { %p2558_p5 = por %p40_p2, %p39_p0  ;;  %p2564_p6 = por %p3081_p4, %p45_p3 }
  0x10   : > { %p195_p7 = scmp.eq.s32.totalorder %s2540_s28, 1  ;;  %p201_p8 = scmp.eq.s32.totalorder %s1854_s29, 1 }
  0x11   : > { %s3088_s12 = scalar_select %p2564_p6, 1, 0 }
  0x12   : > { %p1855_p9 = scmp.ge.s32.totalorder %s2469_s27, 1  ;;  %p208_p10 = scmp.lt.s32.totalorder %s2469_s27, 3 }
  0x13   : > { %p2571_p11 = por %p195_p7, %p39_p0  ;;  %p2575_p12 = por %p201_p8, %p45_p3 }
  0x14   : > { %p2579_p13 = pnand %p1855_p9, %p208_p10  ;;  %s3092_s1 = sld [smem:[#allocation14_spill]] }
  0x15   : > { %s3089_s13 = scalar_select %p2571_p11, 1, 0 }
  0x16   : > { %s3090_s14 = scalar_select %p2575_p12, 1, 0 }
  0x17   : > { %s3091_s15 = scalar_select %p2579_p13, 1, 0 }
  0x18   : > { %p2276_p1 = pneg %p2579_p13  ;;  %p2293_p2 = scmp.lt.s32.totalorder %s2469_s27, 2 }
  0x19   : > { %s232_s22 = sshll.u32 %s3075_s2, 4  ;;  %s233_s22 = int_to_ptr.vmem [resolvable:$true] %s232_s22 }
  0x1a   : > { %s221_s18 = sshll.u32 %s3092_s1, 4  ;;  %p2592_p7 = pnand %p2276_p1, %p3081_p4  ;;  %s222_s18 = int_to_ptr.vmem [resolvable:$true] %s221_s18 }
  0x1b   : > { %p2601_p3 = pnand %p2293_p2, %p2558_p5  ;;  %s2335_s29 = scalar_lea.vmem %s222_s18, 64 }
  0x1c   : > { %p2336_p8 = scmp.ne.s32.totalorder %s222_s18, %s2335_s29  ;;  %p2337_p9 = pneg %p2592_p7 }
  0x1d   : > { %s3094_s23 = scalar_select %p2601_p3, 1, 0 }
  0x1e   : > { %p2338_p10 = pnand %p2337_p9, %p2336_p8  ;;  %p2343_p0 = scmp.lt.s32.totalorder %s222_s18, %s222_s18 }
  0x1f   : > { %p2344_p4 = scmp.lt.s32.totalorder %s2335_s29, %s2335_s29 }
  0x20   : > { %p2339_p1 = pneg %p2338_p10 }
  0x21   : > { %p2345_p12 = por %p2344_p4, %p2343_p0 }
  0x23   : > { %p2346_p11 = pnand %p2345_p12, %p2339_p1 }
  0x25   : > { %2349 = shalt.err (!%p2346_p11)
}
  0x26   : > { %s2471_s8 = smov [#allocation6]   ;;  %s255_s9 = sand.u32 1, %s2465_s26  }
  0x27   : > { %2279 = dma.vmem_to_smem (!%p2592_p7), %s222_s18, 64, %s2471_s8, [#allocation5]  }
  0x28   : > { %s2350_s11 = scalar_lea.vmem %s233_s22, 32  ;;  %p2358_p8 = scmp.lt.s32.totalorder %s233_s22, %s233_s22 }
  0x29   : > { %p2351_p5 = scmp.ne.s32.totalorder %s233_s22, %s2350_s11  ;;  %p2359_p10 = scmp.lt.s32.totalorder %s2350_s11, %s2350_s11 }
  0x2b   : > { %p2353_p2 = pnand %p2351_p5, %p2337_p9  ;;  %p2360_p13 = por %p2359_p10, %p2358_p8 }
  0x2d   : > { %p2354_p6 = pneg %p2353_p2 }
  0x2f   : > { %p2361_p3 = pnand %p2360_p13, %p2354_p6 }
  0x31   : > { %2364 = shalt.err (!%p2361_p3)
}
  0x32   : > { %s2472_s16 = smov [#allocation7]   ;;  %s1859_s17 = sshll.u32 %s255_s9, 7 }
  0x33   : > { %2282 = dma.vmem_to_smem (!%p2592_p7), %s233_s22, 32, %s2472_s16, [#allocation8]  }
  0x34   : > { %s1980_s18 = sshll.u32 %s2469_s27, 11  ;;  %s259_s8 = scalar_lea.vmem [#allocation2], %s1859_s17 }
  0x35   : > { %s2622_s29 = scalar_lea.hbm %s3073_s0, %s1980_s18  ;;  %s266_s11 = sshll.u32 %s259_s8, 4  ;;  %s2624_s11 = int_to_ptr.vmem [resolvable:$true] %s266_s11 }
  0x36   : > { %s2626_s19 = scalar_lea.sflag [#allocation3], %s255_s9  ;;  %s2365_s1 = scalar_lea.hbm %s2622_s29, 2048 }
  0x37   : > { %p2366_p4 = scmp.ne.s32.totalorder %s2622_s29, %s2365_s1  ;;  %p3095_p6 = scmp.ne.s32.totalorder %s3094_s23, 0 }
  0x38   : > { %s2370_s18 = scalar_lea.hbm %s3073_s0, 4096  ;;  %p2371_p0 = scmp.lt.u32.totalorder %s2622_s29, %s3073_s0 }
  0x39   : > { %p2367_p11 = pneg %p3095_p6  ;;  %p2372_p7 = scmp.lt.u32.totalorder %s2370_s18, %s2365_s1 }
  0x3a   : > { %p2374_p9 = scmp.lt.u32.totalorder %s2365_s1, %s2622_s29 }
  0x3b   : > { %p2368_p12 = pnand %p2367_p11, %p2366_p4  ;;  %p2373_p3 = por %p2372_p7, %p2371_p0 }
  0x3d   : > { %p2369_p13 = pneg %p2368_p12  ;;  %p2375_p1 = por %p2374_p9, %p2373_p3 }
  0x3f   : > { %p2376_p5 = pnand %p2375_p1, %p2369_p13 }
  0x41   : > { %2379 = shalt.err (!%p2376_p5)
}
  0x42   : > { %s2380_s9 = scalar_lea.vmem %s2624_s11, 2048  ;;  %s2473_s17 = smov [#allocation2]  }
  0x43   : > { %p2381_p2 = scmp.ne.s32.totalorder %s2624_s11, %s2380_s9  ;;  %s2385_s8 = sshll.u32 %s2473_s17, 4  ;;  %s2386_s8 = int_to_ptr.vmem [resolvable:$false] %s2385_s8 }
  0x44   : > { %s2387_s22 = scalar_lea.vmem %s2386_s8, 4096  ;;  %p2388_p4 = scmp.lt.s32.totalorder %s2624_s11, %s2386_s8 }
  0x45   : > { %p2383_p8 = pnand %p2381_p2, %p2367_p11  ;;  %p2389_p12 = scmp.lt.s32.totalorder %s2387_s22, %s2380_s9 }
  0x47   : > { %p2384_p10 = pneg %p2383_p8  ;;  %p2390_p0 = por %p2389_p12, %p2388_p4 }
  0x49   : > { %p2391_p7 = pnand %p2390_p0, %p2384_p10 }
  0x4b   : > { %2394 = shalt.err (!%p2391_p7)
}
  0x4c   : > { %s2474_s1 = smov 128   ;;  %s2475_s16 = smov 8  }
  0x4d   : > { %2286 = dma.hbm_to_vmem [thread:$0]  (!%p3095_p6), %s2622_s29, 2048, %s2624_s11, %s2626_s19, %s2474_s1, %s2474_s1, %s2475_s16  }
  0x4e   : > { %p3096_p11 = scmp.ne.s32.totalorder %s3091_s15, 0 }
  0x4f   : > { %s2657_s18 = sand.u32 (!%p3096_p11), 1, %s2461_s25   ;;  %p3097_p13 = scmp.ne.s32.totalorder (!%p3096_p11), %s3088_s12, 0 }
  0x50   : > { %278 = sbr.rel (%p3096_p11) target bundleno = 1479 (0x5c7), region = 48  ;;  %s1863_s20 = sshll.u32 (!%p3096_p11), %s2657_s18, 7 }
  0x51   : > { %s281_s21 = scalar_lea.sflag (!%p3096_p11), [#allocation3], %s2657_s18  ;;  %s2663_s9 = scalar_lea.vmem (!%p3096_p11), [#allocation2], %s1863_s20 }
  0x57   : > { %2440 = dma.done.wait (%p3097_p13), %s281_s21, 2048  }
  0x58   : > { %2442 = vsyncadd (%p3097_p13), %s281_s21, 4294965248  ;;  %p3098_p6 = scmp.eq.s32.totalorder %s2540_s28, 0 }
  0x5a   : > { %2444 = dma.done.wait (%p3098_p6), [#allocation5], 64   ;;  %p3099_p3 = pmov %p3098_p6 }
  0x5c   : > { %2446 = vsyncadd (%p3099_p3), [#allocation5], 4294967232  ;;  %p3100_p9 = pmov %p3099_p3 }
  0x5d   : > { %p3101_p1 = pmov %p3099_p3 }
  0x5e   : > { %2448 = dma.done.wait (%p3100_p9), [#allocation8], 32  }
  0x5f   : > { %2450 = vsyncadd (%p3101_p1), [#allocation8], 4294967264 }
  0x60   : > { %297 = sfence }
  0x61   : > { %v351_v0 = vld [vmem:[%s3078_s5] sm:$0xff]  ;;  %v352_v1 = vld [vmem:[%s3078_s5 + $0x8] sm:$0xff]  ;;  %s353_s11 = sld [smem:[#allocation6]]  ;;  %s1881_s19 = sld [smem:[#allocation6 + $0x1]]  ;;  %v2698_v5 = vld [vmem:[%s2663_s9 + $0x10] sm:$0xff]  ;;  %vm399_vm0 = vcmask 130048  }
  0x62   : > { %v2683_v2 = vpack.c.bf16 %v352_v1, %v351_v0  ;;  %s1882_s17 = sld [smem:[#allocation6 + $0x2]]  ;;  %s2686_s8 = sld [smem:[#allocation6 + $0x3]]  ;;  %v2690_v3 = vld [vmem:[%s2663_s9] sm:$0xff]  ;;  %v2693_v4 = vld [vmem:[%s2663_s9 + $0x8] sm:$0xff]  ;;  %v2701_v6 = vld [vmem:[%s2663_s9 + $0x18] sm:$0xff]  ;;  %vm1262_vm1 = vcmask 261120  }
  0x63   : > { %s2695_s22 = sld [smem:[#allocation6 + $0x4]]  ;;  %s2703_s1 = sld [smem:[#allocation6 + $0x5]]  ;;  %v2706_v7 = vld [vmem:[%s2663_s9 + $0x20] sm:$0xff]  ;;  %v2709_v8 = vld [vmem:[%s2663_s9 + $0x28] sm:$0xff]  ;;  %v2714_v10 = vld [vmem:[%s2663_s9 + $0x30] sm:$0xff]  ;;  %vm1727_vm2 = vcmask 523264  }
  0x64   : > { %2199 = vmatprep.subr.bf16.mxu0 %v2683_v2  ;;  %s2711_s16 = sld [smem:[#allocation6 + $0x6]]  ;;  %s2718_s21 = sld [smem:[#allocation6 + $0x7]]  ;;  %v2721_v14 = vld [vmem:[%s2663_s9 + $0x38] sm:$0xff]  ;;  %v2726_v18 = vld [vmem:[%s2663_s9 + $0x40] sm:$0xff]  ;;  %v2732_v22 = vld [vmem:[%s2663_s9 + $0x48] sm:$0xff] }
  0x65   : > { %2201 = vmatpush3.bf16.msra.mxu0 %v2683_v2  ;;  %v2737_v26 = vld [vmem:[%s2663_s9 + $0x50] sm:$0xff]  ;;  %v2742_v30 = vld [vmem:[%s2663_s9 + $0x58] sm:$0xff]  ;;  %v2746_v33 = vld [vmem:[%s2663_s9 + $0x60] sm:$0xff]  ;;  %s1894_s29 = sld [smem:[#allocation6 + $0x80]]  ;;  %s2803_s15 = sld [smem:[#allocation6 + $0x85]] }
  0x66   : > { %v2751_v37 = vld [vmem:[%s2663_s9 + $0x68] sm:$0xff]  ;;  %v2755_v40 = vld [vmem:[%s2663_s9 + $0x70] sm:$0xff]  ;;  %v2760_v44 = vld [vmem:[%s2663_s9 + $0x78] sm:$0xff]  ;;  %s2795_s9 = sld [smem:[#allocation6 + $0x104]]  ;;  %s2807_s23 = sld [smem:[#allocation6 + $0x105]] }
  0x67   : > { %v354_v9 = vstv %s353_s11  ;;  %v358_v13 = vstv %s1881_s19  ;;  %v2771_v57 = vld [vmem:[%s3076_s3] sm:$0xff]  ;;  %v2778_v58 = vld [vmem:[%s3076_s3 + $0x10] sm:$0xff]  ;;  %s1895_s11 = sld [smem:[#allocation6 + $0x81]]  ;;  %s1908_s19 = sld [smem:[#allocation6 + $0x100]] }
  0x68   : > { %v355_v11 = vmul.f32 %v354_v9, %v2690_v3  ;;  %v356_v12 = vmul.f32 %v354_v9, %v2693_v4  ;;  %v359_v15 = vmul.f32 %v2698_v5, %v358_v13  ;;  %v360_v16 = vmul.f32 %v2701_v6, %v358_v13  ;;  %2076 = vmatprep.mubr.msk.f32.mxu1 %vm399_vm0, %v2778_v58  ;;  %s2813_s12 = sld [smem:[#allocation6 + $0x86]]  ;;  %p3102_p2 = scmp.ne.s32.totalorder %s3089_s13, 0 }
  0x69   : > { %v364_v17 = vstv %s1882_s17  ;;  %v370_v21 = vstv %s2686_s8  ;;  %v376_v25 = vstv %s2695_s22  ;;  %v382_v28 = vstv %s2703_s1  ;;  %s1909_s17 = sld [smem:[#allocation6 + $0x101]]  ;;  %s1896_s8 = sld [smem:[#allocation6 + $0x82]] }
  0x6a   : > { %v365_v19 = vmul.f32 %v2706_v7, %v364_v17  ;;  %v366_v20 = vmul.f32 %v2709_v8, %v364_v17  ;;  %v361_v23 = vadd.f32 %v359_v15, %v355_v11  ;;  %v371_v24 = vmul.f32 %v2714_v10, %v370_v21  ;;  %s2782_s22 = sld [smem:[#allocation6 + $0x102]]  ;;  %s2784_s1 = sld [smem:[#allocation6 + $0x83]] }
  0x6b   : > { %v372_v27 = vmul.f32 %v2721_v14, %v370_v21  ;;  %v362_v29 = vadd.f32 %v360_v16, %v356_v12  ;;  %v377_v32 = vmul.f32 %v2726_v18, %v376_v25  ;;  %v378_v34 = vmul.f32 %v2732_v22, %v376_v25 }
  0x6c   : > { %v367_v31 = vadd.f32 %v365_v19, %v361_v23  ;;  %v388_v35 = vstv %s2711_s16  ;;  %v383_v39 = vmul.f32 %v2737_v26, %v382_v28  ;;  %v384_v41 = vmul.f32 %v2742_v30, %v382_v28  ;;  %s2786_s16 = sld [smem:[#allocation6 + $0x103]] }
  0x6d   : > { %v368_v36 = vadd.f32 %v366_v20, %v362_v29  ;;  %v394_v42 = vstv %s2718_s21  ;;  %v389_v46 = vmul.f32 %v2746_v33, %v388_v35  ;;  %v390_v47 = vmul.f32 %v2751_v37, %v388_v35  ;;  %s2790_s21 = sld [smem:[#allocation6 + $0x84]] }
  0x6e   : > { %v373_v38 = vadd.f32 %v371_v24, %v367_v31  ;;  %v395_v50 = vmul.f32 %v2755_v40, %v394_v42  ;;  %v396_v51 = vmul.f32 %v2760_v44, %v394_v42  ;;  %v579_v59 = vstv %s1894_s29  ;;  %s2817_s29 = sld [smem:[#allocation6 + $0x106]] }
  0x6f   : > { %v374_v43 = vadd.f32 %v372_v27, %v368_v36  ;;  %v583_v60 = vstv %s1895_s11  ;;  %v791_v61 = vstv %s1908_s19  ;;  %v795_v62 = vstv %s1909_s17  ;;  %s2823_s11 = sld [smem:[#allocation6 + $0x87]]  ;;  %s1938_s17 = sld [smem:[#allocation7 + $0x3]] }
  0x70   : > { %v379_v45 = vadd.f32 %v377_v32, %v373_v38  ;;  %v580_v63 = vmul.f32 %v579_v59, %v2690_v3  ;;  %v584_v0 = vmul.f32 %v2698_v5, %v583_v60  ;;  %v589_v1 = vstv %s1896_s8  ;;  %s2827_s19 = sld [smem:[#allocation6 + $0x107]]  ;;  %s1954_s8 = sld [smem:[#allocation7 + $0x83]] }
  0x71   : > { %v380_v48 = vadd.f32 %v378_v34, %v374_v43  ;;  %v792_v9 = vmul.f32 %v791_v61, %v2690_v3  ;;  %v796_v11 = vmul.f32 %v2698_v5, %v795_v62  ;;  %v801_v12 = vstv %s2782_s22 }
  0x72   : > { %v385_v49 = vadd.f32 %v383_v39, %v379_v45  ;;  %v581_v13 = vmul.f32 %v579_v59, %v2693_v4  ;;  %v585_v15 = vmul.f32 %v2701_v6, %v583_v60  ;;  %v586_v16 = vadd.f32 %v584_v0, %v580_v63 }
  0x73   : > { %v386_v52 = vadd.f32 %v384_v41, %v380_v48  ;;  %v590_v17 = vmul.f32 %v2706_v7, %v589_v1  ;;  %v793_v19 = vmul.f32 %v791_v61, %v2693_v4  ;;  %v797_v20 = vmul.f32 %v2701_v6, %v795_v62 }
  0x74   : > { %v391_v53 = vadd.f32 %v389_v46, %v385_v49  ;;  %v595_v21 = vstv %s2784_s1  ;;  %v798_v23 = vadd.f32 %v796_v11, %v792_v9  ;;  %v802_v24 = vmul.f32 %v2706_v7, %v801_v12  ;;  %s1226_s1 = sld [smem:[#allocation7]] }
  0x75   : > { %v392_v54 = vadd.f32 %v390_v47, %v386_v52  ;;  %v807_v25 = vstv %s2786_s16  ;;  %v591_v27 = vmul.f32 %v2709_v8, %v589_v1  ;;  %v587_v28 = vadd.f32 %v585_v15, %v581_v13  ;;  %s1922_s16 = sld [smem:[#allocation6 + $0x180]] }
  0x76   : > { %v397_v55 = vadd.f32 %v395_v50, %v391_v53  ;;  %v592_v29 = vadd.f32 %v590_v17, %v586_v16  ;;  %v596_v31 = vmul.f32 %v2714_v10, %v595_v21  ;;  %v803_v32 = vmul.f32 %v2709_v8, %v801_v12 }
  0x77   : > { %v398_v56 = vadd.f32 %v396_v51, %v392_v54  ;;  %v799_v34 = vadd.f32 %v797_v20, %v793_v19  ;;  %v601_v35 = vstv %s2790_s21  ;;  %v804_v36 = vadd.f32 %v802_v24, %v798_v23  ;;  %s1923_s21 = sld [smem:[#allocation6 + $0x181]] }
  0x78   : > { %2066 = vmatprep.mubr.msk.f32.mxu0 %vm399_vm0, %v397_v55  ;;  %v808_v38 = vmul.f32 %v2714_v10, %v807_v25  ;;  %v813_v39 = vstv %s2795_s9  ;;  %v597_v41 = vmul.f32 %v2721_v14, %v595_v21  ;;  %v593_v42 = vadd.f32 %v591_v27, %v587_v28  ;;  %s1924_s9 = sld [smem:[#allocation6 + $0x182]] }
  0x79   : > { %2067 = vmatmul.mubr.msk.f32.vlgmr.msra.gmra.mrb[0].mxu0 %vm399_vm0, %v398_v56  ;;  %v598_v43 = vadd.f32 %v596_v31, %v592_v29  ;;  %v602_v45 = vmul.f32 %v2726_v18, %v601_v35  ;;  %v809_v46 = vmul.f32 %v2721_v14, %v807_v25  ;;  %v805_v47 = vadd.f32 %v803_v32, %v799_v34 }
  0x7a   : > { %2073 = vmatprep.mubr.msk.f32.mxu0 %vm399_vm0, %v2771_v57  ;;  %v607_v48 = vstv %s2803_s15  ;;  %v810_v49 = vadd.f32 %v808_v38, %v804_v36  ;;  %v814_v50 = vmul.f32 %v2726_v18, %v813_v39  ;;  %v819_v51 = vstv %s2807_s23  ;;  %v2849_v38 = vld [vmem:[%s3076_s3 + $0x8] sm:$0xff]  ;;  %s1925_s15 = sld [smem:[#allocation6 + $0x183]]  ;;  %s1926_s23 = sld [smem:[#allocation6 + $0x184]] }
  0x7b   : > { %v603_v52 = vmul.f32 %v2732_v22, %v601_v35  ;;  %v599_v53 = vadd.f32 %v597_v41, %v593_v42  ;;  %v604_v54 = vadd.f32 %v602_v45, %v598_v43  ;;  %v608_v55 = vmul.f32 %v2737_v26, %v607_v48 }
  0x7c   : > { %v815_v56 = vmul.f32 %v2732_v22, %v813_v39  ;;  %v811_v59 = vadd.f32 %v809_v46, %v805_v47  ;;  %v613_v60 = vstv %s2813_s12  ;;  %v816_v61 = vadd.f32 %v814_v50, %v810_v49  ;;  %v2854_v39 = vld [vmem:[%s3076_s3 + $0x18] sm:$0xff]  ;;  %s1927_s12 = sld [smem:[#allocation6 + $0x185]] }
  0x7d   : > { %v820_v62 = vmul.f32 %v2737_v26, %v819_v51  ;;  %v825_v63 = vstv %s2817_s29  ;;  %v609_v0 = vmul.f32 %v2742_v30, %v607_v48  ;;  %v605_v1 = vadd.f32 %v603_v52, %v599_v53  ;;  %s1928_s29 = sld [smem:[#allocation6 + $0x186]] }
  0x7e   : > { %v610_v9 = vadd.f32 %v608_v55, %v604_v54  ;;  %v614_v11 = vmul.f32 %v2746_v33, %v613_v60  ;;  %v821_v12 = vmul.f32 %v2742_v30, %v819_v51  ;;  %v817_v13 = vadd.f32 %v815_v56, %v811_v59 }
  0x7f   : > { %v619_v15 = vstv %s2823_s11  ;;  %v822_v16 = vadd.f32 %v820_v62, %v816_v61  ;;  %v826_v17 = vmul.f32 %v2746_v33, %v825_v63  ;;  %v831_v19 = vstv %s2827_s19  ;;  %s2882_s11 = sld [smem:[#allocation6 + $0x187]] }
  0x80   : > { %v615_v21 = vmul.f32 %v2751_v37, %v613_v60  ;;  %v611_v23 = vadd.f32 %v609_v0, %v605_v1  ;;  %v616_v25 = vadd.f32 %v614_v11, %v610_v9  ;;  %v620_v27 = vmul.f32 %v2755_v40, %v619_v15 }
  0x81   : > { %v827_v28 = vmul.f32 %v2751_v37, %v825_v63  ;;  %v823_v29 = vadd.f32 %v821_v12, %v817_v13  ;;  %v828_v32 = vadd.f32 %v826_v17, %v822_v16  ;;  %v832_v34 = vmul.f32 %v2755_v40, %v831_v19 }
  0x82   : > { %v621_v35 = vmul.f32 %v2760_v44, %v619_v15  ;;  %v617_v36 = vadd.f32 %v615_v21, %v611_v23  ;;  %v622_v41 = vadd.f32 %v620_v27, %v616_v25  ;;  %v833_v42 = vmul.f32 %v2760_v44, %v831_v19 }
  0x83   : > { %v829_v43 = vadd.f32 %v827_v28, %v823_v29  ;;  %v834_v45 = vadd.f32 %v832_v34, %v828_v32  ;;  %v1003_v48 = vstv %s1922_s16  ;;  %v1007_v49 = vstv %s1923_s21  ;;  %s1951_s16 = sld [smem:[#allocation7 + $0x80]]  ;;  %s1936_s21 = sld [smem:[#allocation7 + $0x1]] }
  0x84   : > { %v623_v46 = vadd.f32 %v621_v35, %v617_v36  ;;  %v1004_v50 = vmul.f32 %v1003_v48, %v2690_v3  ;;  %v1008_v51 = vmul.f32 %v2698_v5, %v1007_v49  ;;  %v1013_v52 = vstv %s1924_s9  ;;  %s1952_s9 = sld [smem:[#allocation7 + $0x81]] }
  0x85   : > { %v835_v47 = vadd.f32 %v833_v42, %v829_v43  ;;  %v1005_v53 = vmul.f32 %v1003_v48, %v2693_v4  ;;  %v1009_v54 = vmul.f32 %v2701_v6, %v1007_v49  ;;  %v1014_v56 = vmul.f32 %v2706_v7, %v1013_v52 }
  0x86   : > { %v1010_v55 = vadd.f32 %v1008_v51, %v1004_v50  ;;  %v1019_v59 = vstv %s1925_s15  ;;  %v1015_v61 = vmul.f32 %v2709_v8, %v1013_v52  ;;  %v1025_v3 = vstv %s1926_s23  ;;  %s1937_s15 = sld [smem:[#allocation7 + $0x2]] }
  0x87   : > { %v1011_v60 = vadd.f32 %v1009_v54, %v1005_v53  ;;  %v1020_v63 = vmul.f32 %v2714_v10, %v1019_v59  ;;  %v1021_v0 = vmul.f32 %v2721_v14, %v1019_v59  ;;  %v1026_v4 = vmul.f32 %v2726_v18, %v1025_v3  ;;  %s1953_s23 = sld [smem:[#allocation7 + $0x82]] }
  0x88   : > { %v1016_v62 = vadd.f32 %v1014_v56, %v1010_v55  ;;  %v1031_v6 = vstv %s1927_s12  ;;  %v1027_v8 = vmul.f32 %v2732_v22, %v1025_v3  ;;  %v1037_v16 = vstv %s1928_s29 }
  0x89   : > { %v1017_v5 = vadd.f32 %v1015_v61, %v1011_v60  ;;  %v1032_v15 = vmul.f32 %v2737_v26, %v1031_v6  ;;  %v1033_v18 = vmul.f32 %v2742_v30, %v1031_v6  ;;  %v1038_v23 = vmul.f32 %v2746_v33, %v1037_v16 }
  0x8a   : > { %v1022_v1 = vadd.f32 %v1020_v63, %v1016_v62  ;;  %v1043_v27 = vstv %s2882_s11  ;;  %v1039_v29 = vmul.f32 %v2751_v37, %v1037_v16  ;;  %v1490_v34 = vstv %s1951_s16  ;;  %s2476_s11 = smov [#allocation9]  }
  0x8b   : > { %v1023_v11 = vadd.f32 %v1021_v0, %v1017_v5  ;;  %v1045_v33 = vmul.f32 %v2760_v44, %v1043_v27  ;;  %v1223_v44 = vld [vmem:[%s3079_s6 + $0x8] sm:$0xff]  ;;  %v1233_v35 = vstv %s1936_s21  ;;  %v1496_v36 = vstv %s1952_s9  ;;  %s2988_s21 = scalar_lea.vmem [#allocation9], %s1863_s20  ;;  %s1981_s20 = sshll.u32 %s2540_s28, 11 }
  0x8c   : > { %v1028_v10 = vadd.f32 %v1026_v4, %v1022_v1  ;;  %s1759_s9 = sshll.u32 %s2988_s21, 4  ;;  %s3023_s12 = scalar_lea.hbm %s3080_s7, %s1981_s20  ;;  %s3025_s9 = int_to_ptr.vmem [resolvable:$true] %s1759_s9 }
  0x8d   : > { %v1029_v17 = vadd.f32 %v1027_v8, %v1023_v11  ;;  %v1506_v42 = vstv %s1953_s23  ;;  %s1746_s28 = scalar_lea.sflag [#allocation4], %s2657_s18  ;;  %s2395_s29 = scalar_lea.vmem %s3025_s9, 2048 }
  0x8e   : > { %v1034_v21 = vadd.f32 %v1032_v15, %v1028_v10  ;;  %p2396_p5 = scmp.ne.s32.totalorder %s3025_s9, %s2395_s29  ;;  %s2399_s19 = sshll.u32 %s2476_s11, 4  ;;  %s2400_s19 = int_to_ptr.vmem [resolvable:$false] %s2399_s19 }
  0x8f   : > { %v1035_v28 = vadd.f32 %v1033_v18, %v1029_v17  ;;  %p2402_p4 = scmp.lt.s32.totalorder %s3025_s9, %s2400_s19 }
  0x90   : > { %v1040_v26 = vadd.f32 %v1038_v23, %v1034_v21  ;;  %p2397_p8 = pnand %p2396_p5, %p3102_p2 }
  0x91   : > { %v1041_v30 = vadd.f32 %v1039_v29, %v1035_v28 }
  0x92   : > { %p2398_p10 = pneg %p2397_p8 }
 0x14c   : > { %v2068_v20 = vpop.f32.mrb[0].mxu0 }
 0x14d   : > { %v472_v24 = vpop.f32.mrb[1].mxu0 }
 0x14e   : > { %v2202_v31 = vpack.c.bf16 %v2068_v20, %v472_v24 }
 0x150   : > { %2203 = vmatprep.subr.bf16.mxu0 %v2202_v31  ;;  %2262 = vmatprep.subr.bf16.mxu1 %v2202_v31 }
 0x151   : > { %2205 = vmatpush3.bf16.msra.mxu0 %v2202_v31  ;;  %2263 = vmatpush3.bf16.msra.mxu1 %v2202_v31  ;;  %v1044_v31 = vmul.f32 %v2755_v40, %v1043_v27  ;;  %v1047_v40 = vadd.f32 %v1045_v33, %v1041_v30 }
 0x152   : > { %2207 = vmatprep.subr.bf16.mxu0 %v2683_v2  ;;  %2215 = vmatprep.subr.bf16.mxu1 %v2683_v2 }
 0x153   : > { %v1046_v37 = vadd.f32 %v1044_v31, %v1040_v26 }
 0x154   : > { %2074 = vmatmul.mubr.msk.f32.vlgmr.msra.gmra.mrb[2].mxu0 %vm399_vm0, %v2849_v38  ;;  %2077 = vmatmul.mubr.msk.f32.vlgmr.msra.gmra.mrb[0].mxu1 %vm399_vm0, %v2854_v39 }
 0x155   : > { %2209 = vmatpush3.bf16.msra.mxu0 %v2683_v2  ;;  %2083 = vmatprep.mubr.msk.f32.mxu0 %vm399_vm0, %v622_v41  ;;  %v1243_v41 = vstv %s1937_s15 }
 0x156   : > { %2217 = vmatpush3.bf16.msra.mxu1 %v2683_v2  ;;  %2100 = vmatprep.mubr.msk.f32.mxu1 %vm399_vm0, %v834_v45 }
 0x158   : > { %2084 = vmatmul.mubr.msk.f32.vlgmr.msra.gmra.mrb[4].mxu0 %vm399_vm0, %v623_v46 }
 0x159   : > { %2101 = vmatmul.mubr.msk.f32.vlgmr.msra.gmra.mrb[2].mxu1 %vm399_vm0, %v835_v47  ;;  %2090 = vmatprep.mubr.msk.f32.mxu0 %vm399_vm0, %v2771_v57 }
 0x15a   : > { %2107 = vmatprep.mubr.msk.f32.mxu1 %vm399_vm0, %v2771_v57 }
 0x227   : > { %v2075_v7 = vpop.f32.mrb[2].mxu0  ;;  %v2078_v9 = vpop.f32.mrb[0].mxu1 }
 0x228   : > { %v559_v12 = vpop.f32.mrb[3].mxu0  ;;  %v2885_v13 = vpop.f32.mrb[1].mxu1  ;;  %v1492_v45 = vmul.f32 %v2075_v7, %v1490_v34  ;;  %v1494_v47 = vmul.f32 %v2078_v9, %v1490_v34 }
 0x229   : > { %v1491_v50 = vmul.f32 %v1490_v34, %v559_v12  ;;  %v1493_v1 = vmul.f32 %v1490_v34, %v2885_v13 }
 0x22b   : > { %v2085_v14 = vpop.f32.mrb[4].mxu0 }
 0x22c   : > { %v696_v19 = vpop.f32.mrb[5].mxu0  ;;  %v2102_v20 = vpop.f32.mrb[2].mxu1 }
 0x22d   : > { %v2210_v24 = vpack.c.bf16 %v2085_v14, %v696_v19  ;;  %v908_v25 = vpop.f32.mrb[3].mxu1 }
 0x22e   : > { %v2218_v22 = vpack.c.bf16 %v2102_v20, %v908_v25 }
 0x22f   : > { %2211 = vmatprep.subr.bf16.mxu0 %v2210_v24 }
 0x230   : > { %2213 = vmatpush3.bf16.msra.mxu0 %v2210_v24  ;;  %2219 = vmatprep.subr.bf16.mxu1 %v2218_v22 }
 0x231   : > { %2221 = vmatpush3.bf16.msra.mxu1 %v2218_v22  ;;  %2223 = vmatprep.subr.bf16.mxu0 %v2683_v2 }
 0x233   : > { %2091 = vmatmul.mubr.msk.f32.vlgmr.msra.gmra.mrb[6].mxu0 %vm399_vm0, %v2849_v38 }
 0x234   : > { %2225 = vmatpush3.bf16.msra.mxu0 %v2683_v2  ;;  %2108 = vmatmul.mubr.msk.f32.vlgmr.msra.gmra.mrb[4].mxu1 %vm399_vm0, %v2849_v38  ;;  %v1222_v2 = vld [vmem:[%s3079_s6] sm:$0xff] }
 0x235   : > { %2093 = vmatprep.mubr.msk.f32.mxu0 %vm399_vm0, %v2778_v58  ;;  %2110 = vmatprep.mubr.msk.f32.mxu1 %vm399_vm0, %v2778_v58  ;;  %v2918_v32 = vpack.c.bf16 %v1223_v44, %v1222_v2  ;;  %v1225_v2 = vld [vmem:[%s3079_s6 + $0x18] sm:$0xff] }
 0x237   : > { %2094 = vmatmul.mubr.msk.f32.gmra.mrb[8].mxu0 %vm399_vm0, %v2854_v39  ;;  %2231 = vmatprep.subr.bf16.mxu1 %v2918_v32 }
 0x238   : > { %2111 = vmatmul.mubr.msk.f32.gmra.mrb[6].mxu1 %vm399_vm0, %v2854_v39  ;;  %2117 = vmatprep.mubr.msk.f32.mxu0 %vm399_vm0, %v1046_v37 }
 0x239   : > { %2233 = vmatpush3.bf16.msra.mxu1 %v2918_v32 }
 0x23b   : > { %2118 = vmatmul.mubr.msk.f32.vlgmr.msra.gmra.mrb[10].mxu0 %vm399_vm0, %v1047_v40  ;;  %v1224_v40 = vld [vmem:[%s3079_s6 + $0x10] sm:$0xff] }
 0x23c   : > { %2124 = vmatprep.mubr.msk.f32.mxu0 %vm399_vm0, %v2771_v57  ;;  %v1227_v57 = vstv %s1226_s1  ;;  %v2234_v44 = vpack.c.bf16 %v1225_v2, %v1224_v40 }
 0x23d   : > { %v1229_v43 = vmul.f32 %v2075_v7, %v1227_v57  ;;  %v1231_v46 = vmul.f32 %v2078_v9, %v1227_v57  ;;  %v1228_v49 = vmul.f32 %v1227_v57, %v559_v12  ;;  %v1230_v0 = vmul.f32 %v1227_v57, %v2885_v13 }
 0x23e   : > { %2235 = vmatprep.subr.bf16.mxu1 %v2234_v44 }
 0x23f   : > { %2237 = vmatpush3.bf16.msra.mxu1 %v2234_v44 }
 0x240   : > { %2247 = vmatprep.subr.bf16.mxu1 %v2918_v32 }
 0x306   : > { %v2092_v48 = vpop.f32.mrb[6].mxu0 }
 0x307   : > { %v1235_v51 = vmul.f32 %v2092_v48, %v1233_v35  ;;  %v1498_v52 = vmul.f32 %v2092_v48, %v1496_v36  ;;  %v771_v53 = vpop.f32.mrb[7].mxu0  ;;  %v2109_v54 = vpop.f32.mrb[4].mxu1 }
 0x308   : > { %v1234_v55 = vmul.f32 %v1233_v35, %v771_v53  ;;  %v1497_v56 = vmul.f32 %v1496_v36, %v771_v53  ;;  %v1245_v59 = vmul.f32 %v2109_v54, %v1243_v41  ;;  %v1508_v60 = vmul.f32 %v2109_v54, %v1506_v42  ;;  %v983_v61 = vpop.f32.mrb[5].mxu1 }
 0x309   : > { %v1239_v62 = vadd.f32 %v1235_v51, %v1229_v43  ;;  %v1502_v63 = vadd.f32 %v1498_v52, %v1492_v45  ;;  %v1244_v3 = vmul.f32 %v1243_v41, %v983_v61  ;;  %v1507_v5 = vmul.f32 %v1506_v42, %v983_v61 }
 0x30a   : > { %v1238_v4 = vadd.f32 %v1234_v55, %v1228_v49  ;;  %v1501_v6 = vadd.f32 %v1497_v56, %v1491_v50  ;;  %v2095_v7 = vpop.f32.mrb[8].mxu0 }
 0x30b   : > { %v1249_v9 = vadd.f32 %v1245_v59, %v1239_v62  ;;  %v1512_v11 = vadd.f32 %v1508_v60, %v1502_v63  ;;  %v1237_v8 = vmul.f32 %v2095_v7, %v1233_v35  ;;  %v1500_v12 = vmul.f32 %v2095_v7, %v1496_v36  ;;  %v781_v10 = vpop.f32.mrb[9].mxu0  ;;  %v2112_v15 = vpop.f32.mrb[6].mxu1  ;;  %v1214_v59 = vld [vmem:[%s3077_s4] sm:$0xff] }
 0x30c   : > { %v1248_v16 = vadd.f32 %v1244_v3, %v1238_v4  ;;  %v1511_v14 = vadd.f32 %v1507_v5, %v1501_v6  ;;  %v1236_v17 = vmul.f32 %v1233_v35, %v781_v10  ;;  %v1499_v18 = vmul.f32 %v1496_v36, %v781_v10  ;;  %v993_v19 = vpop.f32.mrb[7].mxu1  ;;  %v1216_v6 = vld [vmem:[%s3077_s4 + $0x10] sm:$0xff]  ;;  %v1219_v10 = vld [vmem:[%s3077_s4 + $0x28] sm:$0xff] }
 0x30d   : > { %v1241_v20 = vadd.f32 %v1237_v8, %v1231_v46  ;;  %v1504_v21 = vadd.f32 %v1500_v12, %v1494_v47  ;;  %v1247_v23 = vmul.f32 %v2112_v15, %v1243_v41  ;;  %v1510_v24 = vmul.f32 %v2112_v15, %v1506_v42  ;;  %v1218_v12 = vld [vmem:[%s3077_s4 + $0x20] sm:$0xff]  ;;  %v1220_v15 = vld [vmem:[%s3077_s4 + $0x30] sm:$0xff] }
 0x30e   : > { %v1240_v25 = vadd.f32 %v1236_v17, %v1230_v0  ;;  %v1503_v13 = vadd.f32 %v1499_v18, %v1493_v1  ;;  %v1246_v27 = vmul.f32 %v1243_v41, %v993_v19  ;;  %v1509_v22 = vmul.f32 %v1506_v42, %v993_v19  ;;  %v2119_v28 = vpop.f32.mrb[10].mxu0  ;;  %v1215_v1 = vld [vmem:[%s3077_s4 + $0x8] sm:$0xff] }
 0x30f   : > { %v1251_v29 = vadd.f32 %v1247_v23, %v1241_v20  ;;  %v1514_v26 = vadd.f32 %v1510_v24, %v1504_v21  ;;  %v1120_v31 = vpop.f32.mrb[11].mxu0 }
 0x310   : > { %v1250_v30 = vadd.f32 %v1246_v27, %v1240_v25  ;;  %v1513_v33 = vadd.f32 %v1509_v22, %v1503_v13  ;;  %v2226_v37 = vpack.c.bf16 %v2119_v28, %v1120_v31 }
 0x312   : > { %2227 = vmatprep.subr.bf16.mxu0 %v2226_v37 }
 0x313   : > { %2229 = vmatpush3.bf16.msra.mxu0 %v2226_v37 }
 0x316   : > { %2125 = vmatmul.mubr.msk.f32.vlgmr.msra.gmra.mrb[12].mxu0 %vm399_vm0, %v2849_v38  ;;  %v1253_v38 = vstv %s1938_s17  ;;  %s2401_s17 = scalar_lea.vmem %s2400_s19, 4096 }
 0x317   : > { %2127 = vmatprep.mubr.msk.f32.mxu0 %vm399_vm0, %v2778_v58  ;;  %v1516_v58 = vstv %s1954_s8  ;;  %p2403_p12 = scmp.lt.s32.totalorder %s2401_s17, %s2395_s29 }
 0x319   : > { %p2404_p0 = por %p2403_p12, %p2402_p4 }
 0x31a   : > { %2128 = vmatmul.mubr.msk.f32.gmra.mrb[14].mxu0 %vm399_vm0, %v2854_v39 }
 0x31b   : > { %2152 = vmatprep.mubr.msk.f32.mxu0 %vm1262_vm1, %v1214_v59  ;;  %p2405_p7 = pnand %p2404_p0, %p2398_p10 }
 0x3e9   : > { %v2126_v57 = vpop.f32.mrb[12].mxu0 }
 0x3ea   : > { %v1255_v34 = vmul.f32 %v2126_v57, %v1253_v38  ;;  %v1518_v39 = vmul.f32 %v2126_v57, %v1516_v58  ;;  %v1195_v35 = vpop.f32.mrb[13].mxu0 }
 0x3eb   : > { %v1254_v36 = vmul.f32 %v1253_v38, %v1195_v35  ;;  %v1517_v41 = vmul.f32 %v1516_v58, %v1195_v35 }
 0x3ec   : > { %v1259_v42 = vadd.f32 %v1255_v34, %v1249_v9  ;;  %v1522_v43 = vadd.f32 %v1518_v39, %v1512_v11  ;;  %v1217_v11 = vld [vmem:[%s3077_s4 + $0x18] sm:$0xff] }
 0x3ed   : > { %v1258_v45 = vadd.f32 %v1254_v36, %v1248_v16  ;;  %v1521_v46 = vadd.f32 %v1517_v41, %v1511_v14  ;;  %v2129_v47 = vpop.f32.mrb[14].mxu0  ;;  %v1221_v16 = vld [vmem:[%s3077_s4 + $0x38] sm:$0xff] }
 0x3ee   : > { %v1257_v48 = vmul.f32 %v2129_v47, %v1253_v38  ;;  %v1520_v49 = vmul.f32 %v2129_v47, %v1516_v58  ;;  %v1205_v50 = vpop.f32.mrb[15].mxu0 }
 0x3ef   : > { %v1256_v51 = vmul.f32 %v1253_v38, %v1205_v50  ;;  %v1519_v52 = vmul.f32 %v1516_v58, %v1205_v50  ;;  %2138 = vmatprep.mubr.msk.f32.mxu1 %vm1262_vm1, %v1258_v45 }
 0x3f0   : > { %v1261_v53 = vadd.f32 %v1257_v48, %v1251_v29  ;;  %v1524_v54 = vadd.f32 %v1520_v49, %v1514_v26  ;;  %2139 = vmatmul.mubr.msk.f32.vlgmr.msra.gmra.mrb[8].mxu1 %vm1262_vm1, %v1259_v42 }
 0x3f1   : > { %v1260_v55 = vadd.f32 %v1256_v51, %v1250_v30  ;;  %v1523_v56 = vadd.f32 %v1519_v52, %v1513_v33  ;;  %2249 = vmatpush3.bf16.msra.mxu1 %v2918_v32 }
 0x3f2   : > { %2251 = vmatprep.subr.bf16.mxu1 %v2234_v44 }
 0x3f3   : > { %2141 = vmatprep.mubr.msk.f32.mxu1 %vm1262_vm1, %v1260_v55 }
 0x3f4   : > { %2142 = vmatmul.mubr.msk.f32.gmra.mrb[10].mxu1 %vm1262_vm1, %v1261_v53 }
 0x3f5   : > { %2253 = vmatpush3.bf16.msra.mxu1 %v2234_v44  ;;  %2172 = vmatprep.mubr.msk.f32.mxu1 %vm1262_vm1, %v1521_v46 }
 0x3f8   : > { %2173 = vmatmul.mubr.msk.f32.vlgmr.msra.gmra.mrb[12].mxu1 %vm1262_vm1, %v1522_v43 }
 0x3f9   : > { %2175 = vmatprep.mubr.msk.f32.mxu1 %vm1262_vm1, %v1523_v56 }
 0x3fc   : > { %2176 = vmatmul.mubr.msk.f32.gmra.mrb[14].mxu1 %vm1262_vm1, %v1524_v54 }
 0x3fd   : > { %2186 = vmatprep.mubr.msk.f32.mxu1 %vm1262_vm1, %v1214_v59 }
 0x4c3   : > { %v2140_v32 = vpop.f32.mrb[8].mxu1 }
 0x4c4   : > { %v1341_v60 = vpop.f32.mrb[9].mxu1 }
 0x4c5   : > { %v2238_v61 = vpack.c.bf16 %v2140_v32, %v1341_v60 }
 0x4c7   : > { %v2143_v62 = vpop.f32.mrb[10].mxu1  ;;  %2239 = vmatprep.subr.bf16.mxu0 %v2238_v61 }
 0x4c8   : > { %v1351_v63 = vpop.f32.mrb[11].mxu1  ;;  %2241 = vmatpush3.bf16.msra.mxu0 %v2238_v61 }
 0x4c9   : > { %v2242_v3 = vpack.c.bf16 %v2143_v62, %v1351_v63 }
 0x4cb   : > { %2243 = vmatprep.subr.bf16.mxu0 %v2242_v3  ;;  %v2174_v5 = vpop.f32.mrb[12].mxu1 }
 0x4cc   : > { %2245 = vmatpush3.bf16.msra.mxu0 %v2242_v3  ;;  %v1603_v0 = vpop.f32.mrb[13].mxu1 }
 0x4cd   : > { %v2254_v4 = vpack.c.bf16 %v2174_v5, %v1603_v0 }
 0x4cf   : > { %v2177_v7 = vpop.f32.mrb[14].mxu1  ;;  %2255 = vmatprep.subr.bf16.mxu1 %v2254_v4  ;;  %2153 = vmatmul.mubr.msk.f32.vlgmr.msra.gmra.mrb[16].mxu0 %vm1262_vm1, %v1215_v1 }
 0x4d0   : > { %v1613_v9 = vpop.f32.mrb[15].mxu1  ;;  %2257 = vmatpush3.bf16.msra.mxu1 %v2254_v4  ;;  %2155 = vmatprep.mubr.msk.f32.mxu0 %vm1262_vm1, %v1216_v6 }
 0x4d1   : > { %v2258_v8 = vpack.c.bf16 %v2177_v7, %v1613_v9 }
 0x4d3   : > { %2259 = vmatprep.subr.bf16.mxu1 %v2258_v8  ;;  %2156 = vmatmul.mubr.msk.f32.gmra.mrb[18].mxu0 %vm1262_vm1, %v1217_v11 }
 0x4d4   : > { %2261 = vmatpush3.bf16.msra.mxu1 %v2258_v8  ;;  %2158 = vmatprep.mubr.msk.f32.mxu0 %vm1262_vm1, %v1218_v12 }
 0x4d7   : > { %2187 = vmatmul.mubr.msk.f32.vlgmr.msra.gmra.mrb[16].mxu1 %vm1262_vm1, %v1215_v1  ;;  %2159 = vmatmul.mubr.msk.f32.gmra.mrb[20].mxu0 %vm1262_vm1, %v1219_v10 }
 0x4d8   : > { %2189 = vmatprep.mubr.msk.f32.mxu1 %vm1262_vm1, %v1216_v6  ;;  %2161 = vmatprep.mubr.msk.f32.mxu0 %vm1262_vm1, %v1220_v15 }
 0x4db   : > { %2190 = vmatmul.mubr.msk.f32.gmra.mrb[18].mxu1 %vm1262_vm1, %v1217_v11  ;;  %2162 = vmatmul.mubr.msk.f32.gmra.mrb[22].mxu0 %vm1262_vm1, %v1221_v16 }
 0x4dc   : > { %2192 = vmatprep.mubr.msk.f32.mxu1 %vm1262_vm1, %v1218_v12 }
 0x4df   : > { %2193 = vmatmul.mubr.msk.f32.gmra.mrb[20].mxu1 %vm1262_vm1, %v1219_v10 }
 0x4e0   : > { %2195 = vmatprep.mubr.msk.f32.mxu1 %vm1262_vm1, %v1220_v15 }
 0x4e3   : > { %2196 = vmatmul.mubr.msk.f32.gmra.mrb[22].mxu1 %vm1262_vm1, %v1221_v16 }
 0x5a2   : > { %v2154_v14 = vpop.f32.mrb[16].mxu0 }
 0x5a3   : > { %1729 = vst.msk [vmem:[%s2988_s21 + $0x8] sm:$0xff] %vm1727_vm2, %v2154_v14  ;;  %v1450_v17 = vpop.f32.mrb[17].mxu0 }
 0x5a4   : > { %1728 = vst.msk [vmem:[%s2988_s21] sm:$0xff] %vm1727_vm2, %v1450_v17 }
 0x5a6   : > { %v2157_v18 = vpop.f32.mrb[18].mxu0 }
 0x5a7   : > { %1731 = vst.msk [vmem:[%s2988_s21 + $0x18] sm:$0xff] %vm1727_vm2, %v2157_v18  ;;  %v1460_v19 = vpop.f32.mrb[19].mxu0 }
 0x5a8   : > { %1730 = vst.msk [vmem:[%s2988_s21 + $0x10] sm:$0xff] %vm1727_vm2, %v1460_v19 }
 0x5aa   : > { %v2188_v20 = vpop.f32.mrb[16].mxu1  ;;  %v2160_v21 = vpop.f32.mrb[20].mxu0 }
 0x5ab   : > { %1968 = vst.msk [vmem:[%s2988_s21 + $0x48] sm:$0xff] %vm1727_vm2, %v2188_v20  ;;  %v1688_v23 = vpop.f32.mrb[17].mxu1  ;;  %1733 = vst.msk [vmem:[%s2988_s21 + $0x28] sm:$0xff] %vm1727_vm2, %v2160_v21  ;;  %v1470_v24 = vpop.f32.mrb[21].mxu0 }
 0x5ac   : > { %1967 = vst.msk [vmem:[%s2988_s21 + $0x40] sm:$0xff] %vm1727_vm2, %v1688_v23  ;;  %1732 = vst.msk [vmem:[%s2988_s21 + $0x20] sm:$0xff] %vm1727_vm2, %v1470_v24 }
 0x5ae   : > { %v2191_v25 = vpop.f32.mrb[18].mxu1  ;;  %v2163_v13 = vpop.f32.mrb[22].mxu0 }
 0x5af   : > { %1970 = vst.msk [vmem:[%s2988_s21 + $0x58] sm:$0xff] %vm1727_vm2, %v2191_v25  ;;  %v1698_v27 = vpop.f32.mrb[19].mxu1  ;;  %1735 = vst.msk [vmem:[%s2988_s21 + $0x38] sm:$0xff] %vm1727_vm2, %v2163_v13  ;;  %v1480_v22 = vpop.f32.mrb[23].mxu0 }
 0x5b0   : > { %1969 = vst.msk [vmem:[%s2988_s21 + $0x50] sm:$0xff] %vm1727_vm2, %v1698_v27  ;;  %1734 = vst.msk [vmem:[%s2988_s21 + $0x30] sm:$0xff] %vm1727_vm2, %v1480_v22 }
 0x5b2   : > { %v2194_v28 = vpop.f32.mrb[20].mxu1 }
 0x5b3   : > { %1972 = vst.msk [vmem:[%s2988_s21 + $0x68] sm:$0xff] %vm1727_vm2, %v2194_v28  ;;  %v1708_v29 = vpop.f32.mrb[21].mxu1 }
 0x5b4   : > { %1971 = vst.msk [vmem:[%s2988_s21 + $0x60] sm:$0xff] %vm1727_vm2, %v1708_v29 }
 0x5b6   : > { %v2197_v26 = vpop.f32.mrb[22].mxu1 }
 0x5b7   : > { %1974 = vst.msk [vmem:[%s2988_s21 + $0x78] sm:$0xff] %vm1727_vm2, %v2197_v26  ;;  %v1718_v31 = vpop.f32.mrb[23].mxu1 }
 0x5b8   : > { %1973 = vst.msk [vmem:[%s2988_s21 + $0x70] sm:$0xff] %vm1727_vm2, %v1718_v31 }
 0x5b9   : > { %2408 = shalt.err (!%p2405_p7)
}
 0x5ba   : > { %s2409_s8 = scalar_lea.hbm %s3023_s12, 2048  ;;  %s2413_s16 = scalar_lea.hbm %s3080_s7, 4096 }
 0x5bb   : > { %p2410_p11 = scmp.ne.s32.totalorder %s3023_s12, %s2409_s8  ;;  %p2414_p3 = scmp.lt.u32.totalorder %s3023_s12, %s3080_s7 }
 0x5bc   : > { %p2415_p9 = scmp.lt.u32.totalorder %s2413_s16, %s2409_s8  ;;  %p2417_p5 = scmp.lt.u32.totalorder %s2409_s8, %s3023_s12 }
 0x5bd   : > { %p2411_p13 = pnand %p2410_p11, %p3102_p2 }
 0x5be   : > { %p2416_p1 = por %p2415_p9, %p2414_p3 }
 0x5bf   : > { %p2412_p6 = pneg %p2411_p13 }
 0x5c0   : > { %p2418_p8 = por %p2417_p5, %p2416_p1 }
 0x5c2   : > { %p2419_p10 = pnand %p2418_p8, %p2412_p6 }
 0x5c4   : > { %2422 = shalt.err (!%p2419_p10)
}
 0x5c5   : > { %s2477_s15 = smov 128   ;;  %s2478_s23 = smov 8  }
 0x5c6   : > { %2274 = dma.vmem_to_hbm [thread:$0]  (%p3102_p2), %s3025_s9, 2048, %s3023_s12, %s1746_s28, %s2477_s15, %s2477_s15, %s2478_s23  }
 0x5c7 PF: > { %s1774_s29 = sand.u32 1, %s2457_s24   ;;  %p3103_p4 = scmp.ne.s32.totalorder %s3090_s14, 0 }
 0x5c8   : > { %p3104_p12 = scmp.ge.s32.totalorder %s2469_s27, 2  ;;  %s1775_s11 = scalar_lea.sflag [#allocation4], %s1774_s29 }
 0x5ca   : > { %p2288_p0 = pnand %p3104_p12, %p3103_p4 }
 0x5cc   : > { %2452 = dma.done.wait (!%p2288_p0), %s1775_s11, 2048  }
 0x5cd   : > { %2454 = vsyncadd (!%p2288_p0), %s1775_s11, 4294965248  ;;  %p22_p7 = scmp.ge.s32.totalorder %s2544_s30, 4   ;;  %s3105_s24 = smov %s2461_s25 }
 0x5ce   : > { %s3106_s25 = smov %s2465_s26  ;;  %s3107_s26 = smov %s2556_s10 }
 0x5cf   : > { %s3108_s27 = smov %s2544_s30  ;;  %24 = sbr.rel (!%p22_p7) target bundleno = 9 (0x9), region = 110 }
 0x5d6   :  { %1780 = vsyncpa [#allocation3], 1 }
 0x5d7   :  { %1782 = vsyncpa [#allocation3 + $0x1], 1 }
 0x5d8   :  { %1783 = vsyncpa [#allocation4], 1 }
 0x5d9   :  { %1785 = vsyncpa [#allocation4 + $0x1], 1 }
 0x5da   :  { %1786 = vsyncpa [#allocation5], 1 }
 0x5db   :  { %1788 = vsyncpa [#allocation5 + $0x1], 1 }
 0x5dc   :  { %1789 = vsyncpa [#allocation8], 1 }

</bundles_post_ra>
